<compile_context>
chip_gen: v7x
topology: tpu7x:2x2x1
jax: 0.10.0
libtpu: 0.0.40
codegen_flags: <defaults>
</compile_context>

<pallas_src>
import functools

import jax
import jax.numpy as jnp
from jax.experimental import pallas as pl
from jax.experimental.pallas import tpu as pltpu


# ----------------------------- fused Pallas kernel ---------------------------
def _modulator_kernel(z_ref, wh_ref, wz_ref, b_ref, o_ref, *, num_layers):
    # z_ref : (1, d_in_pad)            f32   padded latent row
    # wh_ref: (L, h_pad, h_pad)        f32   stacked W_i[:, :dim_hidden].T (layer 0 unused)
    # wz_ref: (L, d_in_pad, h_pad)     f32   stacked W_i[:, dim_hidden:].T (layer 0: full W_0.T)
    # b_ref : (L, h_pad)               f32   stacked biases
    # o_ref : (L, h_pad)               f32   stacked hiddens (lane-dense output)
    z = z_ref[...]                                       # (1, d_in_pad)
    h = None
    for i in range(num_layers):                          # static unrolled layer loop
        y = jnp.dot(z, wz_ref[i], preferred_element_type=jnp.float32)
        y = y + b_ref[pl.ds(i, 1), :]                    # (1, h_pad)
        if i > 0:
            y = y + jnp.dot(h, wh_ref[i], preferred_element_type=jnp.float32)
        h = jnp.maximum(y, 0.0)                          # (1, h_pad)
        o_ref[pl.ds(i, 1), :] = h


# ----------------------------- parameter handling ----------------------------
def _round_up(x, m):
    return ((x + m - 1) // m) * m


def init_modulator_params(key, dim_in, dim_hidden, num_layers):
    """PyTorch-style nn.Linear init. Returns list of (W, b) with W: (dim_hidden, dim)."""
    params = []
    for ind in range(num_layers):
        d = dim_in if ind == 0 else dim_hidden + dim_in
        key, k_w, k_b = jax.random.split(key, 3)
        bound = 1.0 / jnp.sqrt(jnp.float32(d))
        w = jax.random.uniform(k_w, (dim_hidden, d), jnp.float32, -bound, bound)
        b = jax.random.uniform(k_b, (dim_hidden,), jnp.float32, -bound, bound)
        params.append((w, b))
    return params


def pack_params(raw_params, dim_in, dim_hidden):
    """Split + zero-pad + stack weights for the fused kernel (exact, no value change)."""
    L = len(raw_params)
    h_pad = _round_up(dim_hidden, 128)      # lane-dense feature dim
    d_in_pad = _round_up(dim_in, 8)         # sublane-aligned latent dim
    wh = jnp.zeros((L, h_pad, h_pad), jnp.float32)
    wz = jnp.zeros((L, d_in_pad, h_pad), jnp.float32)
    bs = jnp.zeros((L, h_pad), jnp.float32)
    for i, (w, b) in enumerate(raw_params):
        if i == 0:
            wz = wz.at[i, :dim_in, :dim_hidden].set(w.T)
        else:
            wh = wh.at[i, :dim_hidden, :dim_hidden].set(w[:, :dim_hidden].T)
            wz = wz.at[i, :dim_in, :dim_hidden].set(w[:, dim_hidden:].T)
        bs = bs.at[i, :dim_hidden].set(b)
    return wh, wz, bs, d_in_pad, h_pad


# ----------------------------- forward wrappers -------------------------------
def modulator_forward(z, packed, dim_in, dim_hidden):
    """z: (dim_in,) f32 -> tuple of (dim_hidden,) hiddens, one fused pallas_call."""
    wh, wz, bs, d_in_pad, h_pad = packed
    num_layers = wh.shape[0]
    z_row = jnp.zeros((1, d_in_pad), jnp.float32).at[0, :dim_in].set(z)

    vmem = pl.BlockSpec(memory_space=pltpu.MemorySpace.VMEM)
    out = pl.pallas_call(
        functools.partial(_modulator_kernel, num_layers=num_layers),
        out_shape=jax.ShapeDtypeStruct((num_layers, h_pad), jnp.float32),
        in_specs=[vmem, vmem, vmem, vmem],
        out_specs=vmem,
    )(z_row, wh, wz, bs)

    # slice padded lanes back off -> tuple of (dim_hidden,) like the torch module
    return tuple(out[i, :dim_hidden] for i in range(num_layers))


def modulator_forward_ref(z, raw_params):
    """Pure-JAX reference with the original concat formulation."""
    x = z
    hiddens = []
    for w, b in raw_params:
        h = jnp.maximum(w @ x + b, 0.0)
        hiddens.append(h)
        x = jnp.concatenate([h, z], axis=0)
    return tuple(hiddens)


# ----------------------------------- main -------------------------------------
if __name__ == "__main__":
    dim_in, dim_hidden, num_layers = 8, 32, 3

    key = jax.random.PRNGKey(0)
    key, k_z = jax.random.split(key)
    z = jax.random.normal(k_z, (dim_in,), jnp.float32)

    raw_params = init_modulator_params(key, dim_in, dim_hidden, num_layers)
    packed = pack_params(raw_params, dim_in, dim_hidden)

    hiddens = modulator_forward(z, packed, dim_in, dim_hidden)
    hiddens = jax.block_until_ready(hiddens)

    # correctness check against the pure-JAX (concat-based) reference
    ref = modulator_forward_ref(z, raw_params)
    for h, r in zip(hiddens, ref):
        assert h.shape == (dim_hidden,)
        assert jnp.max(jnp.abs(h - r)) < 1e-5

    print("KERNEL_OK")
</pallas_src>

<mosaic_0001>
module attributes {stable_mosaic.version = 11 : i64} {
  func.func @_modulator_kernel(%arg0: memref<1x8xf32, #tpu.memory_space<vmem>>, %arg1: memref<3x128x128xf32, #tpu.memory_space<vmem>>, %arg2: memref<3x8x128xf32, #tpu.memory_space<vmem>>, %arg3: memref<3x128xf32, #tpu.memory_space<vmem>>, %arg4: memref<3x128xf32, #tpu.memory_space<vmem>>) attributes {dimension_semantics = [], scalar_prefetch = 0 : i64, scratch_operands = 0 : i64, tpu.core_type = #tpu.core_type<tc>} {
    %c0 = arith.constant 0 : index
    %c0_0 = arith.constant 0 : index
    %0 = vector.load %arg0[%c0, %c0_0] : memref<1x8xf32, #tpu.memory_space<vmem>>, vector<1x8xf32>
    %c0_1 = arith.constant 0 : index
    %c0_2 = arith.constant 0 : index
    %c0_3 = arith.constant 0 : index
    %1 = vector.load %arg2[%c0_1, %c0_2, %c0_3] : memref<3x8x128xf32, #tpu.memory_space<vmem>>, vector<1x8x128xf32>
    %2 = vector.shape_cast %1 : vector<1x8x128xf32> to vector<8x128xf32>
    %cst = arith.constant dense<0.000000e+00> : vector<1x128xf32>
    %3 = tpu.matmul %0, %2, %cst {dimension_numbers = #tpu.dot_dimension_numbers<[1], [0], [0], [1], [0, 0, 1, 1], [], []>} : vector<1x8xf32>, vector<8x128xf32>, vector<1x128xf32> -> vector<1x128xf32>
    %c0_4 = arith.constant 0 : index
    %c0_5 = arith.constant 0 : index
    %4 = vector.load %arg3[%c0_4, %c0_5] : memref<3x128xf32, #tpu.memory_space<vmem>>, vector<1x128xf32>
    %5 = arith.addf %3, %4 : vector<1x128xf32>
    %cst_6 = arith.constant 0.000000e+00 : f32
    %6 = vector.broadcast %cst_6 : f32 to vector<1x128xf32>
    %7 = arith.maximumf %5, %6 : vector<1x128xf32>
    %c0_7 = arith.constant 0 : index
    %c0_8 = arith.constant 0 : index
    %8 = vector.load %arg4[%c0_7, %c0_8] : memref<3x128xf32, #tpu.memory_space<vmem>>, vector<1x128xf32>
    tpu.vector_store %arg4[%c0_7, %c0_8], %7 {strides = array<i32>} : memref<3x128xf32, #tpu.memory_space<vmem>>, vector<1x128xf32>,
    %c1 = arith.constant 1 : index
    %c0_9 = arith.constant 0 : index
    %c0_10 = arith.constant 0 : index
    %9 = vector.load %arg2[%c1, %c0_9, %c0_10] : memref<3x8x128xf32, #tpu.memory_space<vmem>>, vector<1x8x128xf32>
    %10 = vector.shape_cast %9 : vector<1x8x128xf32> to vector<8x128xf32>
    %cst_11 = arith.constant dense<0.000000e+00> : vector<1x128xf32>
    %11 = tpu.matmul %0, %10, %cst_11 {dimension_numbers = #tpu.dot_dimension_numbers<[1], [0], [0], [1], [0, 0, 1, 1], [], []>} : vector<1x8xf32>, vector<8x128xf32>, vector<1x128xf32> -> vector<1x128xf32>
    %c1_12 = arith.constant 1 : index
    %c0_13 = arith.constant 0 : index
    %12 = vector.load %arg3[%c1_12, %c0_13] : memref<3x128xf32, #tpu.memory_space<vmem>>, vector<1x128xf32>
    %13 = arith.addf %11, %12 : vector<1x128xf32>
    %c1_14 = arith.constant 1 : index
    %c0_15 = arith.constant 0 : index
    %c0_16 = arith.constant 0 : index
    %14 = vector.load %arg1[%c1_14, %c0_15, %c0_16] : memref<3x128x128xf32, #tpu.memory_space<vmem>>, vector<1x128x128xf32>
    %15 = vector.shape_cast %14 : vector<1x128x128xf32> to vector<128x128xf32>
    %cst_17 = arith.constant dense<0.000000e+00> : vector<1x128xf32>
    %16 = tpu.matmul %7, %15, %cst_17 {dimension_numbers = #tpu.dot_dimension_numbers<[1], [0], [0], [1], [0, 0, 1, 1], [], []>} : vector<1x128xf32>, vector<128x128xf32>, vector<1x128xf32> -> vector<1x128xf32>
    %17 = arith.addf %13, %16 : vector<1x128xf32>
    %cst_18 = arith.constant 0.000000e+00 : f32
    %18 = vector.broadcast %cst_18 : f32 to vector<1x128xf32>
    %19 = arith.maximumf %17, %18 : vector<1x128xf32>
    %c1_19 = arith.constant 1 : index
    %c0_20 = arith.constant 0 : index
    %20 = vector.load %arg4[%c1_19, %c0_20] : memref<3x128xf32, #tpu.memory_space<vmem>>, vector<1x128xf32>
    tpu.vector_store %arg4[%c1_19, %c0_20], %19 {strides = array<i32>} : memref<3x128xf32, #tpu.memory_space<vmem>>, vector<1x128xf32>,
    %c2 = arith.constant 2 : index
    %c0_21 = arith.constant 0 : index
    %c0_22 = arith.constant 0 : index
    %21 = vector.load %arg2[%c2, %c0_21, %c0_22] : memref<3x8x128xf32, #tpu.memory_space<vmem>>, vector<1x8x128xf32>
    %22 = vector.shape_cast %21 : vector<1x8x128xf32> to vector<8x128xf32>
    %cst_23 = arith.constant dense<0.000000e+00> : vector<1x128xf32>
    %23 = tpu.matmul %0, %22, %cst_23 {dimension_numbers = #tpu.dot_dimension_numbers<[1], [0], [0], [1], [0, 0, 1, 1], [], []>} : vector<1x8xf32>, vector<8x128xf32>, vector<1x128xf32> -> vector<1x128xf32>
    %c2_24 = arith.constant 2 : index
    %c0_25 = arith.constant 0 : index
    %24 = vector.load %arg3[%c2_24, %c0_25] : memref<3x128xf32, #tpu.memory_space<vmem>>, vector<1x128xf32>
    %25 = arith.addf %23, %24 : vector<1x128xf32>
    %c2_26 = arith.constant 2 : index
    %c0_27 = arith.constant 0 : index
    %c0_28 = arith.constant 0 : index
    %26 = vector.load %arg1[%c2_26, %c0_27, %c0_28] : memref<3x128x128xf32, #tpu.memory_space<vmem>>, vector<1x128x128xf32>
    %27 = vector.shape_cast %26 : vector<1x128x128xf32> to vector<128x128xf32>
    %cst_29 = arith.constant dense<0.000000e+00> : vector<1x128xf32>
    %28 = tpu.matmul %19, %27, %cst_29 {dimension_numbers = #tpu.dot_dimension_numbers<[1], [0], [0], [1], [0, 0, 1, 1], [], []>} : vector<1x128xf32>, vector<128x128xf32>, vector<1x128xf32> -> vector<1x128xf32>
    %29 = arith.addf %25, %28 : vector<1x128xf32>
    %cst_30 = arith.constant 0.000000e+00 : f32
    %30 = vector.broadcast %cst_30 : f32 to vector<1x128xf32>
    %31 = arith.maximumf %29, %30 : vector<1x128xf32>
    %c2_31 = arith.constant 2 : index
    %c0_32 = arith.constant 0 : index
    %32 = vector.load %arg4[%c2_31, %c0_32] : memref<3x128xf32, #tpu.memory_space<vmem>>, vector<1x128xf32>
    tpu.vector_store %arg4[%c2_31, %c0_32], %31 {strides = array<i32>} : memref<3x128xf32, #tpu.memory_space<vmem>>, vector<1x128xf32>,
    return
  }
}

</mosaic_0001>

<bundles_post_ra>
// kernel: tpu_custom_call.1
= control target key start
LH: loop header
LB: loop body
LE: loop exit
PB: predicated region body
PF: predicated region fallthrough
CT: control target
= control target key end

     0   :  { %9 = vsyncpa [#allocation3], 0  ;;  %s892_s0 = inlined_call_operand.hbm [shape: f32[1,8], index: 0, kind: input, shape index: {}]   ;;  %s893_s1 = inlined_call_operand.hbm [shape: f32[3,128,128], index: 1, kind: input, shape index: {}]   ;;  %s894_s2 = inlined_call_operand.hbm [shape: f32[3,8,128], index: 2, kind: input, shape index: {}]   ;;  %s895_s3 = inlined_call_operand.vmem [shape: f32[3,128], index: 3, kind: input, shape index: {}]   ;;  %s896_s4 = inlined_call_operand.hbm [shape: f32[3,128], index: 4, kind: output, shape index: {}]  }
   0x1   :  { %10 = vsyncpa [#allocation6], 0 }
   0x2   :  { %11 = vsyncpa [#allocation4], 0  ;;  %s763_s15 = smov [#allocation5]   ;;  %s669_s19 = scalar_lea.hbm %s893_s1, 6144 }
   0x3   :  { %s27_s16 = sshll.u32 %s763_s15, 4  ;;  %p670_p0 = scmp.ne.s32.totalorder %s893_s1, %s669_s19  ;;  %s28_s16 = int_to_ptr.vmem [resolvable:$true] %s27_s16 }
   0x4   :  { %p673_p1 = scmp.lt.u32.totalorder %s669_s19, %s893_s1 }
   0x6   :  { %p675_p2 = pnand %p673_p1, %p670_p0 }
   0x8   :  { %678 = shalt.err (!%p675_p2)
}
   0x9   :  { %s679_s24 = scalar_lea.vmem %s28_s16, 6144  ;;  %p684_p4 = scmp.lt.s32.totalorder %s28_s16, %s28_s16 }
   0xa   :  { %p680_p3 = scmp.ne.s32.totalorder %s28_s16, %s679_s24  ;;  %p685_p5 = scmp.lt.s32.totalorder %s679_s24, %s679_s24 }
   0xc   :  { %p686_p6 = por %p685_p5, %p684_p4 }
   0xe   :  { %p687_p7 = pnand %p686_p6, %p680_p3 }
  0x10   :  { %690 = shalt.err (!%p687_p7)
}
  0x11   :  { %s764_s25 = smov 128   ;;  %s765_s26 = smov 8  }
  0x12   :  { %33 = dma.hbm_to_vmem [thread:$0]  %s893_s1, 6144, %s28_s16, [#allocation6], %s764_s25, %s764_s25, %s765_s26  }
  0x13   :  { %s766_s29 = smov [#allocation2]   ;;  %s767_s5 = smov [#allocation7]  }
  0x14   :  { %s18_s30 = sshll.u32 %s766_s29, 4  ;;  %s39_s6 = sshll.u32 %s767_s5, 4  ;;  %s19_s30 = int_to_ptr.vmem [resolvable:$true] %s18_s30  ;;  %s40_s6 = int_to_ptr.vmem [resolvable:$true] %s39_s6 }
  0x15   :  { %s691_s9 = scalar_lea.hbm %s892_s0, 16 }
  0x16   :  { %p692_p8 = scmp.ne.s32.totalorder %s892_s0, %s691_s9  ;;  %p695_p9 = scmp.lt.u32.totalorder %s691_s9, %s892_s0 }
  0x18   :  { %p697_p10 = pnand %p695_p9, %p692_p8 }
  0x1a   :  { %700 = shalt.err (!%p697_p10)
}
  0x1b   :  { %s701_s1 = scalar_lea.vmem %s19_s30, 16  ;;  %s705_s14 = scalar_lea.vmem %s19_s30, 32 }
  0x1c   :  { %p702_p11 = scmp.ne.s32.totalorder %s19_s30, %s701_s1  ;;  %p706_p12 = scmp.lt.s32.totalorder %s19_s30, %s19_s30 }
  0x1d   :  { %p707_p13 = scmp.lt.s32.totalorder %s705_s14, %s701_s1 }
  0x1f   :  { %p708_p0 = por %p707_p13, %p706_p12 }
  0x21   :  { %p709_p1 = pnand %p708_p0, %p702_p11 }
  0x23   :  { %712 = shalt.err (!%p709_p1)
}
  0x24   :  { %21 = dma.hbm_to_vmem [thread:$0]  %s892_s0, 16, %s19_s30, [#allocation3]  }
  0x25   :  { %s713_s19 = scalar_lea.hbm %s894_s2, 384 }
  0x26   :  { %p714_p2 = scmp.ne.s32.totalorder %s894_s2, %s713_s19  ;;  %p717_p3 = scmp.lt.u32.totalorder %s713_s19, %s894_s2 }
  0x28   :  { %p719_p4 = pnand %p717_p3, %p714_p2 }
  0x2a   :  { %722 = shalt.err (!%p719_p4)
}
  0x2b   :  { %s723_s24 = scalar_lea.vmem %s40_s6, 384  ;;  %p728_p6 = scmp.lt.s32.totalorder %s40_s6, %s40_s6 }
  0x2c   :  { %p724_p5 = scmp.ne.s32.totalorder %s40_s6, %s723_s24  ;;  %p729_p7 = scmp.lt.s32.totalorder %s723_s24, %s723_s24 }
  0x2e   :  { %p730_p8 = por %p729_p7, %p728_p6 }
  0x30   :  { %p731_p9 = pnand %p730_p8, %p724_p5 }
  0x32   :  { %734 = shalt.err (!%p731_p9)
}
  0x33   :  { %45 = dma.hbm_to_vmem [thread:$0]  %s894_s2, 384, %s40_s6, [#allocation6], %s764_s25, %s764_s25, %s765_s26  }
  0x34   :  { %757 = dma.done.wait [#allocation3], 16  }
  0x35   :  { %758 = vsyncadd [#allocation3], 4294967280 }
  0x36   :  { %759 = dma.done.wait [#allocation6], 6528  }
  0x37   :  { %760 = vsyncadd [#allocation6], 4294960768  ;;  %v768_v0 = vmov 0.0   ;;  %vm769_vm0 = vmmov 0   ;;  %vm60_vm1 = vcmask 64512   ;;  %v58_v1 = vld [vmem:[#allocation7] sm:$0xff] }
  0x38   :  { %521 = vmatprep.subr.mxu0 %v768_v0  ;;  %523 = vmatprep.mubr.msk.f32.mxu0 %vm769_vm0, %v768_v0  ;;  %v57_v2 = vld [vmem:[#allocation2] sm:$0x1]  ;;  %v137_v3 = vld [vmem:[#allocation7 + $0x8] sm:$0xff]  ;;  %v210_v4 = vld [vmem:[#allocation5 + $0x80] sm:$0xff]  ;;  %v770_v7 = vmov 0.0|0.0   ;;  %s771_s5 = smov [#allocation8]  }
  0x39   :  { %526 = vmatprep.subr.mxu1 %v768_v0  ;;  %528 = vmatprep.mubr.msk.f32.mxu1 %vm769_vm0, %v768_v0  ;;  %v211_v5 = vld [vmem:[#allocation5 + $0x88] sm:$0xff]  ;;  %v212_v6 = vld [vmem:[#allocation5 + $0x90] sm:$0xff]  ;;  %v213_v9 = vld [vmem:[#allocation5 + $0x98] sm:$0xff]  ;;  %s468_s6 = sshll.u32 %s771_s5, 4  ;;  %s469_s6 = int_to_ptr.vmem [resolvable:$true] %s468_s6 }
  0x3a   :  { %522 = vmatpush3.msra.mxu0 %v58_v1  ;;  %527 = vmatpush3.msra.mxu1 %v137_v3  ;;  %v607_v8 = vpack.c.bf16 %v211_v5, %v210_v4  ;;  %v610_v10 = vpack.c.bf16 %v213_v9, %v212_v6  ;;  %v214_v11 = vld [vmem:[#allocation5 + $0xa0] sm:$0xff]  ;;  %v215_v12 = vld [vmem:[#allocation5 + $0xa8] sm:$0xff]  ;;  %v216_v14 = vld [vmem:[#allocation5 + $0xb0] sm:$0xff]  ;;  %s735_s7 = scalar_lea.vmem %s469_s6, 64  ;;  %p740_p11 = scmp.lt.s32.totalorder %s469_s6, %s469_s6 }
  0x3b   :  { %524 = vmatmul.mubr.msk.f32.vlgmr.msra.gmra.mrb[0].mxu0 %vm60_vm1, %v57_v2  ;;  %606 = vmatprep.subr.bf16.mxu1 %v770_v7  ;;  %v613_v13 = vpack.c.bf16 %v215_v12, %v214_v11  ;;  %v217_v15 = vld [vmem:[#allocation5 + $0xb8] sm:$0xff]  ;;  %v218_v17 = vld [vmem:[#allocation5 + $0xc0] sm:$0xff]  ;;  %v219_v18 = vld [vmem:[#allocation5 + $0xc8] sm:$0xff]  ;;  %p736_p10 = scmp.ne.s32.totalorder %s469_s6, %s735_s7  ;;  %p741_p12 = scmp.lt.s32.totalorder %s735_s7, %s735_s7 }
  0x3c   :  { %529 = vmatmul.mubr.msk.f32.vlgmr.msra.gmra.mrb[0].mxu1 %vm60_vm1, %v57_v2  ;;  %566 = vmatprep.subr.mxu0 %v768_v0  ;;  %v616_v16 = vpack.c.bf16 %v217_v15, %v216_v14  ;;  %v619_v19 = vpack.c.bf16 %v219_v18, %v218_v17  ;;  %v220_v20 = vld [vmem:[#allocation5 + $0xd0] sm:$0xff]  ;;  %v221_v21 = vld [vmem:[#allocation5 + $0xd8] sm:$0xff]  ;;  %v222_v23 = vld [vmem:[#allocation5 + $0xe0] sm:$0xff] }
  0x3d   :  { %608 = vmatpush3.bf16.msra.mxu1 %v607_v8  ;;  %563 = vmatprep.mubr.msk.f32.mxu1 %vm769_vm0, %v768_v0  ;;  %v622_v22 = vpack.c.bf16 %v221_v21, %v220_v20  ;;  %v223_v24 = vld [vmem:[#allocation5 + $0xe8] sm:$0xff]  ;;  %v224_v26 = vld [vmem:[#allocation5 + $0xf0] sm:$0xff]  ;;  %v225_v27 = vld [vmem:[#allocation5 + $0xf8] sm:$0xff]  ;;  %p742_p13 = por %p741_p12, %p740_p11 }
  0x3e   :  { %609 = vmatprep.subr.bf16.mxu1 %v770_v7  ;;  %568 = vmatprep.mubr.msk.f32.mxu0 %vm769_vm0, %v768_v0  ;;  %v625_v25 = vpack.c.bf16 %v223_v24, %v222_v23  ;;  %v628_v28 = vpack.c.bf16 %v225_v27, %v224_v26  ;;  %v300_v29 = vld [vmem:[#allocation7 + $0x10] sm:$0xff]  ;;  %v373_v30 = vld [vmem:[#allocation5 + $0x100] sm:$0xff]  ;;  %v374_v31 = vld [vmem:[#allocation5 + $0x108] sm:$0xff] }
  0x3f   :  { %567 = vmatpush3.msra.mxu0 %v300_v29  ;;  %v631_v32 = vpack.c.bf16 %v374_v31, %v373_v30  ;;  %v375_v33 = vld [vmem:[#allocation5 + $0x110] sm:$0xff]  ;;  %v376_v34 = vld [vmem:[#allocation5 + $0x118] sm:$0xff]  ;;  %v377_v36 = vld [vmem:[#allocation5 + $0x120] sm:$0xff]  ;;  %p743_p0 = pnand %p742_p13, %p736_p10 }
  0x40   :  { %630 = vmatprep.subr.bf16.mxu0 %v770_v7  ;;  %569 = vmatmul.mubr.msk.f32.vlgmr.msra.gmra.mrb[2].mxu0 %vm60_vm1, %v57_v2  ;;  %v634_v35 = vpack.c.bf16 %v376_v34, %v375_v33  ;;  %v378_v37 = vld [vmem:[#allocation5 + $0x128] sm:$0xff]  ;;  %v379_v39 = vld [vmem:[#allocation5 + $0x130] sm:$0xff]  ;;  %v380_v40 = vld [vmem:[#allocation5 + $0x138] sm:$0xff] }
  0x41   :  { %611 = vmatpush3.bf16.msra.mxu1 %v610_v10  ;;  %632 = vmatpush3.bf16.msra.mxu0 %v631_v32  ;;  %v637_v38 = vpack.c.bf16 %v378_v37, %v377_v36  ;;  %v640_v41 = vpack.c.bf16 %v380_v40, %v379_v39  ;;  %v381_v42 = vld [vmem:[#allocation5 + $0x140] sm:$0xff]  ;;  %v382_v43 = vld [vmem:[#allocation5 + $0x148] sm:$0xff]  ;;  %v383_v45 = vld [vmem:[#allocation5 + $0x150] sm:$0xff] }
  0x42   :  { %612 = vmatprep.subr.bf16.mxu1 %v770_v7  ;;  %603 = vmatprep.mubr.msk.f32.mxu0 %vm769_vm0, %v768_v0  ;;  %v643_v44 = vpack.c.bf16 %v382_v43, %v381_v42  ;;  %v384_v46 = vld [vmem:[#allocation5 + $0x158] sm:$0xff]  ;;  %v385_v48 = vld [vmem:[#allocation5 + $0x160] sm:$0xff]  ;;  %v386_v49 = vld [vmem:[#allocation5 + $0x168] sm:$0xff] }
  0x43   :  { %633 = vmatprep.subr.bf16.mxu0 %v770_v7  ;;  %v646_v47 = vpack.c.bf16 %v384_v46, %v383_v45  ;;  %v649_v50 = vpack.c.bf16 %v386_v49, %v385_v48  ;;  %v59_v51 = vld [vmem:[%s895_s3] sm:$0x1]  ;;  %v388_v57 = vld [vmem:[#allocation5 + $0x178] sm:$0xff]  ;;  %v138_v59 = vld [vmem:[%s895_s3 + $0x1] sm:$0x1] }
  0x44   :  { %v387_v56 = vld [vmem:[#allocation5 + $0x170] sm:$0xff]  ;;  %v301_v0 = vld [vmem:[%s895_s3 + $0x2] sm:$0x1] }
  0x45   :  { %614 = vmatpush3.bf16.msra.mxu1 %v613_v13  ;;  %635 = vmatpush3.bf16.msra.mxu0 %v634_v35  ;;  %v652_v58 = vpack.c.bf16 %v388_v57, %v387_v56 }
  0x46   :  { %615 = vmatprep.subr.bf16.mxu1 %v770_v7  ;;  %636 = vmatprep.subr.bf16.mxu0 %v770_v7 }
  0x49   :  { %617 = vmatpush3.bf16.msra.mxu1 %v616_v16  ;;  %638 = vmatpush3.bf16.msra.mxu0 %v637_v38 }
  0x4a   :  { %618 = vmatprep.subr.bf16.mxu1 %v770_v7  ;;  %639 = vmatprep.subr.bf16.mxu0 %v770_v7 }
  0x4d   :  { %620 = vmatpush3.bf16.msra.mxu1 %v619_v19  ;;  %641 = vmatpush3.bf16.msra.mxu0 %v640_v41 }
  0x4e   :  { %621 = vmatprep.subr.bf16.mxu1 %v770_v7  ;;  %642 = vmatprep.subr.bf16.mxu0 %v770_v7 }
  0x51   :  { %623 = vmatpush3.bf16.msra.mxu1 %v622_v22  ;;  %644 = vmatpush3.bf16.msra.mxu0 %v643_v44 }
  0x52   :  { %624 = vmatprep.subr.bf16.mxu1 %v770_v7  ;;  %645 = vmatprep.subr.bf16.mxu0 %v770_v7 }
  0x55   :  { %626 = vmatpush3.bf16.msra.mxu1 %v625_v25  ;;  %647 = vmatpush3.bf16.msra.mxu0 %v646_v47 }
  0x56   :  { %627 = vmatprep.subr.bf16.mxu1 %v770_v7  ;;  %648 = vmatprep.subr.bf16.mxu0 %v770_v7 }
  0x59   :  { %629 = vmatpush3.bf16.msra.mxu1 %v628_v28  ;;  %650 = vmatpush3.bf16.msra.mxu0 %v649_v50 }
  0x5a   :  { %651 = vmatprep.subr.bf16.mxu0 %v770_v7 }
  0x5d   :  { %653 = vmatpush3.bf16.msra.mxu0 %v652_v58 }
 0x10e   :  { %v130_v52 = vpop.f32.mrb[0].mxu0 }
 0x10f   :  { %v131_v53 = vadd.f32 %v130_v52, %v59_v51  ;;  %v525_v54 = vpop.f32.mrb[1].mxu0 }
 0x111   :  { %v134_v55 = vmax.f32 %v131_v53, 0.0 }
 0x113   :  { %135 = vst [vmem:[#allocation8] sm:$0x1] %v134_v55  ;;  %564 = vmatmul.mubr.f32.vlgmr.msra.gmra.mrb[0].mxu1 %v134_v55 }
 0x1e6   :  { %v292_v60 = vpop.f32.mrb[0].mxu1 }
 0x1e7   :  { %v654_v61 = vadd.f32 %v292_v60, %v138_v59  ;;  %v565_v62 = vpop.f32.mrb[1].mxu1 }
 0x1e9   :  { %v297_v63 = vmax.f32 %v654_v61, 0.0 }
 0x1eb   :  { %298 = vst [vmem:[#allocation8 + $0x1] sm:$0x1] %v297_v63  ;;  %604 = vmatmul.mubr.f32.vlgmr.msra.gmra.mrb[2].mxu0 %v297_v63 }
 0x2be   :  { %v455_v1 = vpop.f32.mrb[2].mxu0 }
 0x2bf   :  { %v655_v2 = vadd.f32 %v455_v1, %v301_v0  ;;  %v605_v3 = vpop.f32.mrb[3].mxu0 }
 0x2c1   :  { %v460_v4 = vmax.f32 %v655_v2, 0.0 }
 0x2c3   :  { %461 = vst [vmem:[#allocation8 + $0x2] sm:$0x1] %v460_v4 }
 0x2c4   :  { %746 = shalt.err (!%p743_p0)
}
 0x2c5   :  { %s747_s10 = scalar_lea.hbm %s896_s4, 64 }
 0x2c6   :  { %p748_p1 = scmp.ne.s32.totalorder %s896_s4, %s747_s10  ;;  %p751_p2 = scmp.lt.u32.totalorder %s747_s10, %s896_s4 }
 0x2c8   :  { %p753_p3 = pnand %p751_p2, %p748_p1 }
 0x2ca   :  { %756 = shalt.err (!%p753_p3)
}
 0x2cb   :  { %471 = dma.vmem_to_hbm [thread:$0]  %s469_s6, 64, %s896_s4, [#allocation4]  }
 0x2cc   :  { %761 = dma.done.wait [#allocation4], 64  }
 0x2cd   :  { %762 = vsyncadd [#allocation4], 4294967232 }
 0x2ce   :  { %475 = vsyncpa [#allocation3], 1 }
 0x2cf   :  { %476 = vsyncpa [#allocation6], 1 }
 0x2d0   :  { %477 = vsyncpa [#allocation4], 1 }

</bundles_post_ra>
